<compile_context>
chip_gen: v7x
topology: tpu7x:2x2x1
jax: 0.10.0
libtpu: 0.0.40
codegen_flags: <defaults>
</compile_context>

<pallas_src>
import jax
import jax.numpy as jnp
from jax.experimental import pallas as pl
from jax.experimental.pallas import tpu as pltpu


def _round_up(x, m):
    return ((x + m - 1) // m) * m


def _patch_proj_kernel(x_ref, w_ref, pos_ref, o_ref):
    # x_ref:   (tm, Kp)  flattened patch rows (K zero-padded to 128 multiple)
    # w_ref:   (Kp, Ep)  projection weight (pre-transposed, zero-padded), resident
    # pos_ref: (tm, Ep)  per-row additive term = positions[1:] + bias (tiled), resident
    # o_ref:   (tm, Ep)  lane-dense output tile (sublane offset 0 -> plain vst)
    proj = jnp.dot(x_ref[...], w_ref[...],
                   preferred_element_type=jnp.float32)      # MXU
    o_ref[...] = (proj + pos_ref[...]).astype(o_ref.dtype)   # single VPU add


def _pick_batch_block(B, n_row, max_rows):
    """Largest divisor BB of B such that the tile (BB*n_row rows) is
    sublane-aligned and within the row budget, preferring >= 2 grid steps
    so v7x's 2 TensorCores both get work."""
    divisors = [d for d in range(1, B + 1) if B % d == 0]
    cand = [d for d in divisors if (d * n_row) % 8 == 0 and d * n_row <= max_rows]
    if not cand:
        # Fall back: any sublane-aligned divisor, else the whole array
        # (block == full array dims is always legal).
        cand = [d for d in divisors if (d * n_row) % 8 == 0] or [B]
    multi = [d for d in cand if B // d >= 2]
    pool = multi if multi else cand
    return max(pool)


def patch_embedding(x, w, b, cls_token, positions, patch_size):
    """x: (B, C, H, W) f32.  w: (n_col, emb) == W^T of nn.Linear.  b: (emb,).
    cls_token: (1, 1, emb).  positions: (num_patches+1, emb).
    Returns (B, num_patches+1, emb), matching the PyTorch forward."""
    B, C, H, W = x.shape
    P = patch_size
    n_row = (H * W) // (P * P)          # num_patches (raw .view semantics)
    n_col = P * P * C
    emb = w.shape[1]

    # --- layout prep (cheap, once per call, in XLA) -------------------------
    # Row-major reshape == torch .view(B, n_row, n_col); flatten batch into M.
    x_flat = jnp.reshape(x, (B * n_row, n_col))

    # Lane/MXU alignment: pad K and E to multiples of 128 (zeros are exact).
    Kp = _round_up(n_col, 128)
    Ep = _round_up(emb, 128)
    x_flat = jnp.pad(x_flat, ((0, 0), (0, Kp - n_col)))
    w_p = jnp.pad(w, ((0, Kp - n_col), (0, Ep - emb)))

    # Precompute the per-patch-row additive term (bias + positional rows 1..).
    pos_body = positions[1:, :] + b[None, :]               # (n_row, emb)
    pos_body = jnp.pad(pos_body, ((0, 0), (0, Ep - emb)))  # (n_row, Ep)

    # Row-tile budget: pick the biggest tile that keeps (double-buffered) x,
    # pos and out tiles plus the resident weight under ~24 MiB of VMEM.
    bud = 24 * 1024 * 1024
    per_row_bytes = 4 * (2 * Kp + 4 * Ep)          # 2x x-buf + 2x pos + 2x out
    fixed_bytes = 2 * Kp * Ep * 4                  # weight (double-buffered)
    if bud > fixed_bytes + per_row_bytes:
        max_rows = max(n_row, (bud - fixed_bytes) // per_row_bytes)
    else:
        max_rows = n_row
    max_rows = min(max_rows, 4096)

    BB = _pick_batch_block(B, n_row, max_rows)
    tm = BB * n_row                                        # rows per grid step
    grid_m = B // BB
    pos_tile = jnp.tile(pos_body, (BB, 1))                 # (tm, Ep), resident

    # Conservative per-step VMEM estimate; only raise the scoped-VMEM limit
    # beyond the 32 MiB default when the tile actually needs it.
    vmem_need = 4 * (2 * tm * Kp + 2 * Kp * Ep + 2 * tm * Ep + 2 * tm * Ep)
    cp = dict(dimension_semantics=("parallel",))
    if vmem_need > 32 * 1024 * 1024:
        cp["vmem_limit_bytes"] = min(int(vmem_need * 5 // 4), 100 * 1024 * 1024)

    out_flat = pl.pallas_call(
        _patch_proj_kernel,
        out_shape=jax.ShapeDtypeStruct((B * n_row, Ep), x.dtype),
        grid=(grid_m,),
        in_specs=[
            pl.BlockSpec((tm, Kp), lambda i: (i, 0)),   # x tile
            pl.BlockSpec((Kp, Ep), lambda i: (0, 0)),   # weight, resident
            pl.BlockSpec((tm, Ep), lambda i: (0, 0)),   # pos+bias, resident
        ],
        out_specs=pl.BlockSpec((tm, Ep), lambda i: (i, 0)),
        compiler_params=pltpu.CompilerParams(**cp),
    )(x_flat, w_p, pos_tile)

    body = out_flat[:, :emb].reshape(B, n_row, emb)

    # cls row (cls_token + positions[0]) spliced in outside the kernel so the
    # kernel's bulk store stays sublane-0 aligned and unmasked.
    row0 = jnp.reshape(cls_token, (1, 1, emb)) + positions[0][None, None, :]
    row0 = jnp.broadcast_to(row0, (B, 1, emb)).astype(x.dtype)
    return jnp.concatenate([row0, body], axis=1)


def patch_embedding_ref(x, w, b, cls_token, positions, patch_size):
    """Pure-JAX reference mirroring the PyTorch forward exactly."""
    B, C, H, W = x.shape
    P = patch_size
    n_row = (H * W) // (P * P)
    n_col = P * P * C
    xm = jnp.reshape(x, (B, n_row, n_col))
    proj = jnp.einsum("bnk,ke->bne", xm, w) + b          # Linear
    cls = jnp.broadcast_to(jnp.reshape(cls_token, (1, 1, -1)),
                           (B, 1, w.shape[1]))
    out = jnp.concatenate([cls, proj], axis=1)
    return out + positions[None, :, :]


if __name__ == "__main__":
    # Small shapes consistent with the module:
    #   in_channels=4, patch_size=4, img_size=16, emb_size=32, batch=2
    B, C, P, IMG, EMB = 2, 4, 4, 16, 32
    num_patches = (IMG // P) * (IMG // P)        # 16
    n_col = P * P * C                            # 64

    key = jax.random.PRNGKey(0)
    kx, kw, kb, kc, kp = jax.random.split(key, 5)

    x = jax.random.normal(kx, (B, C, IMG, IMG), dtype=jnp.float32)
    # nn.Linear(n_col, EMB): torch weight is (EMB, n_col); we keep (n_col, EMB)
    # = W^T so the kernel does x @ W^T directly.
    w = jax.random.normal(kw, (n_col, EMB), dtype=jnp.float32) * 0.02
    b = jax.random.normal(kb, (EMB,), dtype=jnp.float32) * 0.02
    cls_token = jax.random.normal(kc, (1, 1, EMB), dtype=jnp.float32)
    positions = jax.random.normal(kp, (num_patches + 1, EMB), dtype=jnp.float32)

    out = patch_embedding(x, w, b, cls_token, positions, P)
    out = jax.block_until_ready(out)

    ref = patch_embedding_ref(x, w, b, cls_token, positions, P)
    assert out.shape == (B, num_patches + 1, EMB)
    assert jnp.allclose(out, ref, atol=1e-4, rtol=1e-4)

    print("KERNEL_OK")
</pallas_src>

<mosaic_0001>
module attributes {stable_mosaic.version = 11 : i64} {
  func.func @_patch_proj_kernel(%arg0: i32, %arg1: memref<16x128xf32, #tpu.memory_space<vmem>>, %arg2: memref<128x128xf32, #tpu.memory_space<vmem>>, %arg3: memref<16x128xf32, #tpu.memory_space<vmem>>, %arg4: memref<16x128xf32, #tpu.memory_space<vmem>>) attributes {dimension_semantics = [#tpu.dimension_semantics<parallel>], iteration_bounds = array<i64: 2>, scalar_prefetch = 0 : i64, scratch_operands = 0 : i64, tpu.core_type = #tpu.core_type<tc>, window_params = [{transform_indices = @transform_0, window_bounds = array<i64: 16, 128>}, {pipeline_mode = #tpu.pipeline_mode<synchronous>, transform_indices = @transform_1, window_bounds = array<i64: 128, 128>}, {pipeline_mode = #tpu.pipeline_mode<synchronous>, transform_indices = @transform_2, window_bounds = array<i64: 16, 128>}, {transform_indices = @transform_3, window_bounds = array<i64: 16, 128>}]} {
    %c0 = arith.constant 0 : index
    %c0_0 = arith.constant 0 : index
    %0 = vector.load %arg1[%c0, %c0_0] : memref<16x128xf32, #tpu.memory_space<vmem>>, vector<16x128xf32>
    %c0_1 = arith.constant 0 : index
    %c0_2 = arith.constant 0 : index
    %1 = vector.load %arg2[%c0_1, %c0_2] : memref<128x128xf32, #tpu.memory_space<vmem>>, vector<128x128xf32>
    %cst = arith.constant dense<0.000000e+00> : vector<16x128xf32>
    %2 = tpu.matmul %0, %1, %cst {dimension_numbers = #tpu.dot_dimension_numbers<[1], [0], [0], [1], [0, 0, 1, 1], [], []>} : vector<16x128xf32>, vector<128x128xf32>, vector<16x128xf32> -> vector<16x128xf32>
    %c0_3 = arith.constant 0 : index
    %c0_4 = arith.constant 0 : index
    %3 = vector.load %arg3[%c0_3, %c0_4] : memref<16x128xf32, #tpu.memory_space<vmem>>, vector<16x128xf32>
    %4 = arith.addf %2, %3 : vector<16x128xf32>
    %c0_5 = arith.constant 0 : index
    %c0_6 = arith.constant 0 : index
    %5 = vector.load %arg4[%c0_5, %c0_6] : memref<16x128xf32, #tpu.memory_space<vmem>>, vector<16x128xf32>
    tpu.vector_store %arg4[%c0_5, %c0_6], %4 {strides = array<i32>} : memref<16x128xf32, #tpu.memory_space<vmem>>, vector<16x128xf32>,
    return
  }
  func.func @transform_0(%arg0: i32) -> (i32, i32) {
    %c0_i32 = arith.constant 0 : i32
    %c0_i32_0 = arith.constant 0 : i32
    return %arg0, %c0_i32 : i32, i32
  }
  func.func @transform_1(%arg0: i32) -> (i32, i32) {
    %c0_i32 = arith.constant 0 : i32
    %c0_i32_0 = arith.constant 0 : i32
    %c0_i32_1 = arith.constant 0 : i32
    return %c0_i32, %c0_i32_0 : i32, i32
  }
  func.func @transform_2(%arg0: i32) -> (i32, i32) {
    %c0_i32 = arith.constant 0 : i32
    %c0_i32_0 = arith.constant 0 : i32
    %c0_i32_1 = arith.constant 0 : i32
    return %c0_i32, %c0_i32_0 : i32, i32
  }
  func.func @transform_3(%arg0: i32) -> (i32, i32) {
    %c0_i32 = arith.constant 0 : i32
    %c0_i32_0 = arith.constant 0 : i32
    return %arg0, %c0_i32 : i32, i32
  }
}

</mosaic_0001>

<bundles_post_ra>
// kernel: tpu_custom_call.1
= control target key start
LH: loop header
LB: loop body
LE: loop exit
PB: predicated region body
PF: predicated region fallthrough
CT: control target
= control target key end

     0   :  { %8 = vsyncpa [#allocation3], 0  ;;  %s1036_s0 = inlined_call_operand.hbm [shape: f32[32,128], index: 0, kind: input, shape index: {}]   ;;  %s1037_s1 = inlined_call_operand.hbm [shape: f32[128,128], index: 1, kind: input, shape index: {}]   ;;  %s1038_s2 = inlined_call_operand.hbm [shape: f32[16,128], index: 2, kind: input, shape index: {}]   ;;  %s1039_s3 = inlined_call_operand.hbm [shape: f32[32,128], index: 3, kind: output, shape index: {}]  }
   0x1   :  { %10 = vsyncpa [#allocation3 + $0x1], 0 }
   0x2   :  { %11 = vsyncpa [#allocation6], 0 }
   0x3   :  { %12 = vsyncpa [#allocation4], 0 }
   0x4   :  { %14 = vsyncpa [#allocation4 + $0x1], 0  ;;  %s785_s12 = smov 0   ;;  %s787_s13 = smov 0  }
   0x5   :  { %s789_s14 = smov 0   ;;  %s791_s15 = smov 0  }
   0x6 LB: > { %s806_s16 = sadd.s32 4294967295, %s755_s15   ;;  %s423_s17 = sadd.s32 4294967294, %s755_s15   ;;  %s755_s15 = sphi %s791_s15, %s1059_s15   ;;  %s751_s14 = sphi %s789_s14, %s1058_s14   ;;  %s747_s13 = sphi %s787_s13, %s1057_s13   ;;  %s743_s12 = sphi %s785_s12, %s1056_s12  }
   0x7   : > { %p40_p0 = scmp.ne.s32.totalorder %s747_s13, %s743_s12  ;;  %p1040_p1 = scmp.eq.s32.totalorder %s806_s16, 0 }
   0x8   : > { %p112_p3 = scmp.eq.s32.totalorder %s423_s17, 1  ;;  %p424_p5 = scmp.ge.s32.totalorder %s755_s15, 1 }
   0x9   : > { %p815_p4 = por %p1040_p1, %p40_p0  ;;  %p119_p7 = scmp.lt.s32.totalorder %s755_s15, 3 }
   0xa   : > { %p820_p6 = por %p112_p3, %p40_p0  ;;  %s757_s21 = smov [#allocation5]  }
   0xb   : > { %s1043_s18 = scalar_select %p815_p4, 1, 0 }
   0xc   : > { %s1044_s19 = scalar_select %p820_p6, 1, 0 }
   0xd   : > { %p825_p8 = pnand %p424_p5, %p119_p7  ;;  %s131_s22 = sshll.u32 %s757_s21, 4  ;;  %s829_s22 = int_to_ptr.vmem [resolvable:$true] %s131_s22 }
   0xe   : > { %s758_s24 = smov [#allocation7]   ;;  %s599_s28 = scalar_lea.hbm %s1037_s1, 2048 }
   0xf   : > { %p540_p9 = pneg %p825_p8  ;;  %s144_s25 = sshll.u32 %s758_s24, 4  ;;  %s840_s25 = int_to_ptr.vmem [resolvable:$true] %s144_s25 }
  0x10   : > { %p600_p12 = scmp.ne.s32.totalorder %s1037_s1, %s599_s28  ;;  %p606_p5 = scmp.lt.u32.totalorder %s599_s28, %s1037_s1 }
  0x11   : > { %p836_p11 = pnand %p540_p9, %p1040_p1 }
  0x13   : > { %p601_p13 = pneg %p836_p11 }
  0x15   : > { %p602_p0 = pnand %p601_p13, %p600_p12 }
  0x17   : > { %p603_p3 = pneg %p602_p0 }
  0x19   : > { %p608_p7 = pnand %p606_p5, %p603_p3 }
  0x1b   : > { %611 = shalt.err (!%p608_p7)
}
  0x1c   : > { %s612_s6 = scalar_lea.vmem %s829_s22, 2048  ;;  %p620_p2 = scmp.lt.s32.totalorder %s829_s22, %s829_s22 }
  0x1d   : > { %p613_p9 = scmp.ne.s32.totalorder %s829_s22, %s612_s6  ;;  %p621_p12 = scmp.lt.s32.totalorder %s612_s6, %s612_s6 }
  0x1f   : > { %p615_p10 = pnand %p613_p9, %p601_p13  ;;  %p622_p0 = por %p621_p12, %p620_p2 }
  0x21   : > { %p616_p1 = pneg %p615_p10 }
  0x23   : > { %p623_p6 = pnand %p622_p0, %p616_p1 }
  0x25   : > { %626 = shalt.err (!%p623_p6)
}
  0x26   : > { %s759_s7 = smov 128   ;;  %s760_s8 = smov 8  }
  0x27   : > { %543 = dma.hbm_to_vmem [thread:$0]  (!%p836_p11), %s1037_s1, 2048, %s829_s22, [#allocation6], %s759_s7, %s759_s7, %s760_s8  }
  0x28   : > { %s627_s21 = scalar_lea.hbm %s1038_s2, 256 }
  0x29   : > { %p628_p1 = scmp.ne.s32.totalorder %s1038_s2, %s627_s21  ;;  %p634_p10 = scmp.lt.u32.totalorder %s627_s21, %s1038_s2 }
  0x2b   : > { %p630_p2 = pnand %p628_p1, %p601_p13 }
  0x2d   : > { %p631_p6 = pneg %p630_p2 }
  0x2f   : > { %p636_p3 = pnand %p634_p10, %p631_p6 }
  0x31   : > { %639 = shalt.err (!%p636_p3)
}
  0x32   : > { %s640_s22 = scalar_lea.vmem %s840_s25, 256  ;;  %p648_p12 = scmp.lt.s32.totalorder %s840_s25, %s840_s25 }
  0x33   : > { %p641_p5 = scmp.ne.s32.totalorder %s840_s25, %s640_s22  ;;  %p649_p0 = scmp.lt.s32.totalorder %s640_s22, %s640_s22 }
  0x35   : > { %p643_p7 = pnand %p641_p5, %p601_p13  ;;  %p650_p1 = por %p649_p0, %p648_p12 }
  0x37   : > { %p644_p9 = pneg %p643_p7 }
  0x39   : > { %p651_p2 = pnand %p650_p1, %p644_p9 }
  0x3b   : > { %654 = shalt.err (!%p651_p2)
}
  0x3c   : > { %546 = dma.hbm_to_vmem [thread:$0]  (!%p836_p11), %s1038_s2, 256, %s840_s25, [#allocation6], %s759_s7, %s759_s7, %s760_s8  }
  0x3d   : > { %s901_s23 = sadd.s32 1, %s755_s15   ;;  %s27_s4 = sadd.s32 1, %s751_s14 }
  0x3e   : > { %s24_s5 = ssub.s32 %s755_s15, %s901_s23  ;;  %p34_p13 = scmp.ne.s32.totalorder %s751_s14, %s747_s13 }
  0x3f   : > { %p25_p6 = scmp.eq.s32.totalorder %s24_s5, 0  ;;  %p35_p10 = scmp.eq.s32.totalorder %s755_s15, 0 }
  0x40   : > { %p1047_p3 = scmp.eq.s32.totalorder %s806_s16, 1  ;;  %p557_p7 = scmp.lt.s32.totalorder %s755_s15, 2 }
  0x41   : > { %s917_s9 = scalar_select %p25_p6, %s751_s14, %s27_s4  }
  0x42   : > { %p911_p5 = por %p1047_p3, %p34_p13  ;;  %p36_p9 = por %p35_p10, %p34_p13 }
  0x43   : > { %s158_s10 = sand.u32 1, %s751_s14   ;;  %s441_s25 = sshll.u32 %s755_s15, 8 }
  0x44   : > { %s1048_s6 = scalar_select %p911_p5, 1, 0 }
  0x45   : > { %s428_s11 = sshll.u32 %s158_s10, 4  ;;  %s924_s24 = scalar_lea.hbm %s1036_s0, %s441_s25 }
  0x46   : > { %s162_s26 = scalar_lea.vmem [#allocation2], %s428_s11  ;;  %p928_p11 = pnand %p557_p7, %p36_p9 }
  0x47   : > { %s169_s27 = sshll.u32 %s162_s26, 4  ;;  %s932_s22 = scalar_lea.sflag [#allocation3], %s158_s10  ;;  %s926_s27 = int_to_ptr.vmem [resolvable:$true] %s169_s27 }
  0x48   : > { %s655_s29 = scalar_lea.hbm %s924_s24, 256  ;;  %p657_p0 = pneg %p928_p11 }
  0x49   : > { %p656_p12 = scmp.ne.s32.totalorder %s924_s24, %s655_s29  ;;  %s660_s5 = scalar_lea.hbm %s1036_s0, 512 }
  0x4a   : > { %p661_p13 = scmp.lt.u32.totalorder %s924_s24, %s1036_s0  ;;  %p662_p6 = scmp.lt.u32.totalorder %s660_s5, %s655_s29 }
  0x4b   : > { %p658_p1 = pnand %p657_p0, %p656_p12  ;;  %p664_p3 = scmp.lt.u32.totalorder %s655_s29, %s924_s24 }
  0x4c   : > { %p663_p10 = por %p662_p6, %p661_p13 }
  0x4d   : > { %p659_p2 = pneg %p658_p1 }
  0x4e   : > { %p665_p7 = por %p664_p3, %p663_p10 }
  0x50   : > { %p666_p9 = pnand %p665_p7, %p659_p2 }
  0x52   : > { %669 = shalt.err (!%p666_p9)
}
  0x53   : > { %s670_s10 = scalar_lea.vmem %s926_s27, 256  ;;  %s761_s17 = smov [#allocation2]  }
  0x54   : > { %p671_p12 = scmp.ne.s32.totalorder %s926_s27, %s670_s10  ;;  %s675_s21 = sshll.u32 %s761_s17, 4  ;;  %s676_s21 = int_to_ptr.vmem [resolvable:$false] %s675_s21 }
  0x55   : > { %s677_s26 = scalar_lea.vmem %s676_s21, 512  ;;  %p678_p4 = scmp.lt.s32.totalorder %s926_s27, %s676_s21 }
  0x56   : > { %p673_p1 = pnand %p671_p12, %p657_p0  ;;  %p679_p13 = scmp.lt.s32.totalorder %s677_s26, %s670_s10 }
  0x58   : > { %p674_p5 = pneg %p673_p1  ;;  %p680_p6 = por %p679_p13, %p678_p4 }
  0x5a   : > { %p681_p10 = pnand %p680_p6, %p674_p5 }
  0x5c   : > { %684 = shalt.err (!%p681_p10)
}
  0x5d   : > { %550 = dma.hbm_to_vmem [thread:$0]  (!%p928_p11), %s924_s24, 256, %s926_s27, %s932_s22, %s759_s7, %s759_s7, %s760_s8  }
  0x5e   : > { %181 = sbr.rel (%p825_p8) target bundleno = 370 (0x172), region = 32  ;;  %s966_s29 = sand.u32 (!%p825_p8), 1, %s747_s13  }
  0x5f   : > { %s432_s30 = sshll.u32 (!%p825_p8), %s966_s29, 4  ;;  %s184_s4 = scalar_lea.sflag (!%p825_p8), [#allocation3], %s966_s29 }
  0x60   : > { %s972_s28 = scalar_lea.vmem (!%p825_p8), [#allocation2], %s432_s30  ;;  %p1050_p4 = scmp.ne.s32.totalorder (!%p825_p8), %s1043_s18, 0 }
  0x65   : > { %730 = dma.done.wait (%p1050_p4), %s184_s4, 256  }
  0x66   : > { %732 = vsyncadd (%p1050_p4), %s184_s4, 4294967040  ;;  %p1051_p5 = scmp.eq.s32.totalorder %s806_s16, 0 }
  0x68   : > { %734 = dma.done.wait (%p1051_p5), [#allocation6], 2304   ;;  %p1052_p8 = pmov %p1051_p5 }
  0x69   : > { %v222_v0 = vld [vmem:[#allocation5] sm:$0xff]  ;;  %v223_v1 = vld [vmem:[#allocation5 + $0x8] sm:$0xff]  ;;  %v224_v2 = vld [vmem:[#allocation5 + $0x10] sm:$0xff]  ;;  %s217_s18 = scalar_lea.vmem [#allocation8], %s432_s30  ;;  %s442_s7 = sshll.u32 %s806_s16, 8 }
  0x6a   : > { %736 = vsyncadd (%p1052_p8), [#allocation6], 4294964992  ;;  %v496_v3 = vpack.c.bf16 %v223_v1, %v222_v0  ;;  %v225_v4 = vld [vmem:[#allocation5 + $0x18] sm:$0xff]  ;;  %v226_v6 = vld [vmem:[#allocation5 + $0x20] sm:$0xff]  ;;  %s331_s20 = sshll.u32 %s217_s18, 4  ;;  %s992_s27 = scalar_lea.hbm %s1039_s3, %s442_s7  ;;  %s987_s20 = int_to_ptr.vmem [resolvable:$true] %s331_s20 }
  0x6b   : > { %v500_v5 = vpack.c.bf16 %v225_v4, %v224_v2  ;;  %v227_v7 = vld [vmem:[#allocation5 + $0x28] sm:$0xff]  ;;  %v220_v9 = vld [vmem:[%s972_s28] sm:$0xff]  ;;  %v229_v11 = vld [vmem:[#allocation5 + $0x38] sm:$0xff]  ;;  %s318_s22 = scalar_lea.sflag [#allocation4], %s966_s29  ;;  %s685_s5 = scalar_lea.vmem %s987_s20, 256 }
  0x6c   : > { %497 = vmatprep.subr.bf16.mxu0 %v496_v3  ;;  %v504_v8 = vpack.c.bf16 %v227_v7, %v226_v6  ;;  %v228_v10 = vld [vmem:[#allocation5 + $0x30] sm:$0xff]  ;;  %493 = vmatprep.mubr.f32.mxu0 %v220_v9  ;;  %v230_v13 = vld [vmem:[#allocation5 + $0x40] sm:$0xff]  ;;  %v231_v14 = vld [vmem:[#allocation5 + $0x48] sm:$0xff]  ;;  %p686_p11 = scmp.ne.s32.totalorder %s987_s20, %s685_s5  ;;  %p1053_p0 = scmp.ne.s32.totalorder %s1048_s6, 0 }
  0x6d   : > { %499 = vmatpush3.bf16.msra.mxu0 %v496_v3  ;;  %v508_v12 = vpack.c.bf16 %v229_v11, %v228_v10  ;;  %v512_v15 = vpack.c.bf16 %v231_v14, %v230_v13  ;;  %v232_v16 = vld [vmem:[#allocation5 + $0x50] sm:$0xff]  ;;  %v233_v17 = vld [vmem:[#allocation5 + $0x58] sm:$0xff]  ;;  %v234_v19 = vld [vmem:[#allocation5 + $0x60] sm:$0xff]  ;;  %s762_s16 = smov [#allocation8]  }
  0x6e   : > { %501 = vmatprep.subr.bf16.mxu0 %v500_v5  ;;  %v516_v18 = vpack.c.bf16 %v233_v17, %v232_v16  ;;  %v235_v20 = vld [vmem:[#allocation5 + $0x68] sm:$0xff]  ;;  %v236_v22 = vld [vmem:[#allocation5 + $0x70] sm:$0xff]  ;;  %v237_v23 = vld [vmem:[#allocation5 + $0x78] sm:$0xff]  ;;  %p687_p2 = pnand %p686_p11, %p1053_p0  ;;  %s689_s11 = sshll.u32 %s762_s16, 4  ;;  %s690_s11 = int_to_ptr.vmem [resolvable:$false] %s689_s11 }
  0x6f   : > { %v520_v21 = vpack.c.bf16 %v235_v20, %v234_v19  ;;  %v524_v24 = vpack.c.bf16 %v237_v23, %v236_v22  ;;  %v221_v25 = vld [vmem:[%s972_s28 + $0x8] sm:$0xff]  ;;  %v238_v27 = vld [vmem:[#allocation7] sm:$0xff]  ;;  %s691_s25 = scalar_lea.vmem %s690_s11, 512  ;;  %p692_p7 = scmp.lt.s32.totalorder %s987_s20, %s690_s11 }
  0x70   : > { %v239_v26 = vld [vmem:[#allocation7 + $0x8] sm:$0xff]  ;;  %p688_p3 = pneg %p687_p2  ;;  %p693_p9 = scmp.lt.s32.totalorder %s691_s25, %s685_s5 }
  0x71   : > { %503 = vmatpush3.bf16.msra.mxu0 %v500_v5 }
  0x72   : > { %505 = vmatprep.subr.bf16.mxu0 %v504_v8  ;;  %p694_p12 = por %p693_p9, %p692_p7 }
  0x74   : > { %p695_p1 = pnand %p694_p12, %p688_p3 }
  0x75   : > { %507 = vmatpush3.bf16.msra.mxu0 %v504_v8 }
  0x76   : > { %509 = vmatprep.subr.bf16.mxu0 %v508_v12 }
  0x79   : > { %511 = vmatpush3.bf16.msra.mxu0 %v508_v12 }
  0x7a   : > { %513 = vmatprep.subr.bf16.mxu0 %v512_v15 }
  0x7d   : > { %515 = vmatpush3.bf16.msra.mxu0 %v512_v15 }
  0x7e   : > { %517 = vmatprep.subr.bf16.mxu0 %v516_v18 }
  0x81   : > { %519 = vmatpush3.bf16.msra.mxu0 %v516_v18 }
  0x82   : > { %521 = vmatprep.subr.bf16.mxu0 %v520_v21 }
  0x85   : > { %523 = vmatpush3.bf16.msra.mxu0 %v520_v21 }
  0x86   : > { %525 = vmatprep.subr.bf16.mxu0 %v524_v24 }
  0x89   : > { %527 = vmatpush3.bf16.msra.mxu0 %v524_v24 }
  0x8c   : > { %494 = vmatmul.mubr.f32.vlgmr.msra.gmra.mrb[0].mxu0 %v221_v25 }
 0x15f   : > { %v495_v28 = vpop.f32.mrb[0].mxu0 }
 0x160   : > { %v312_v29 = vadd.f32 %v495_v28, %v239_v26  ;;  %v306_v30 = vpop.f32.mrb[1].mxu0 }
 0x161   : > { %v307_v31 = vadd.f32 %v306_v30, %v238_v27 }
 0x162   : > { %316 = vst [vmem:[%s217_s18 + $0x8] sm:$0xff] %v312_v29 }
 0x163   : > { %315 = vst [vmem:[%s217_s18] sm:$0xff] %v307_v31 }
 0x164   : > { %698 = shalt.err (!%p695_p1)
}
 0x165   : > { %s699_s10 = scalar_lea.hbm %s992_s27, 256  ;;  %s703_s26 = scalar_lea.hbm %s1039_s3, 512 }
 0x166   : > { %p700_p13 = scmp.ne.s32.totalorder %s992_s27, %s699_s10  ;;  %p704_p4 = scmp.lt.u32.totalorder %s992_s27, %s1039_s3 }
 0x167   : > { %p705_p5 = scmp.lt.u32.totalorder %s703_s26, %s699_s10  ;;  %p707_p11 = scmp.lt.u32.totalorder %s699_s10, %s992_s27 }
 0x168   : > { %p701_p6 = pnand %p700_p13, %p1053_p0 }
 0x169   : > { %p706_p8 = por %p705_p5, %p704_p4 }
 0x16a   : > { %p702_p10 = pneg %p701_p6 }
 0x16b   : > { %p708_p2 = por %p707_p11, %p706_p8 }
 0x16d   : > { %p709_p3 = pnand %p708_p2, %p702_p10 }
 0x16f   : > { %712 = shalt.err (!%p709_p3)
}
 0x170   : > { %s763_s28 = smov 128   ;;  %s764_s18 = smov 8  }
 0x171   : > { %538 = dma.vmem_to_hbm [thread:$0]  (%p1053_p0), %s987_s20, 256, %s992_s27, %s318_s22, %s763_s28, %s763_s28, %s764_s18  }
 0x172 PF: > { %s346_s7 = sand.u32 1, %s743_s12   ;;  %p1054_p7 = scmp.ne.s32.totalorder %s1044_s19, 0 }
 0x173   : > { %p1055_p9 = scmp.ge.s32.totalorder %s755_s15, 2  ;;  %s347_s8 = scalar_lea.sflag [#allocation4], %s346_s7 }
 0x175   : > { %p552_p12 = pnand %p1055_p9, %p1054_p7 }
 0x177   : > { %738 = dma.done.wait (!%p552_p12), %s347_s8, 256  }
 0x178   : > { %740 = vsyncadd (!%p552_p12), %s347_s8, 4294967040  ;;  %p17_p1 = scmp.ge.s32.totalorder %s901_s23, 4   ;;  %s1056_s12 = smov %s747_s13 }
 0x179   : > { %s1057_s13 = smov %s751_s14  ;;  %s1058_s14 = smov %s917_s9 }
 0x17a   : > { %s1059_s15 = smov %s901_s23  ;;  %19 = sbr.rel (!%p17_p1) target bundleno = 6 (0x6), region = 85 }
 0x181   :  { %352 = vsyncpa [#allocation3], 1 }
 0x182   :  { %354 = vsyncpa [#allocation3 + $0x1], 1 }
 0x183   :  { %355 = vsyncpa [#allocation6], 1 }
 0x184   :  { %356 = vsyncpa [#allocation4], 1 }
 0x185   :  { %358 = vsyncpa [#allocation4 + $0x1], 1 }

</bundles_post_ra>
